<compile_context>
chip_gen: v7x
topology: tpu7x:2x2x1
jax: 0.10.0
libtpu: 0.0.40
codegen_flags: <defaults>
</compile_context>

<pallas_src>
import jax
import jax.numpy as jnp
from jax.experimental import pallas as pl
from jax.experimental.pallas import tpu as pltpu


def _mbd_kernel(mj_ref, mi_ref, g_ref, out_ref, acc_ref):
    """One (j-block, i-block) step of the pairwise minibatch-discrimination sum."""
    i = pl.program_id(1)

    @pl.when(i == 0)
    def _():
        acc_ref[...] = jnp.zeros_like(acc_ref)

    m_j = mj_ref[...]                                   # [TJ, BC]  (j: output rows)
    m_i = mi_ref[...]                                   # [TI, BC]  (i: "other" samples)

    # Pairwise differences for this tile, BC on lanes:  d[ti, tj, bc].
    d = jnp.abs(m_i[:, None, :] - m_j[None, :, :])      # [TI, TJ, BC]

    # -L1 over each feature's C channels == batched matmul (batch = TI) against the
    # resident (-1/0) grouping matrix.  Output [TI, B, TJ] is lane-dense in TJ.
    # NOTE: default MXU dot precision; use precision=HIGHEST for strict f32 parity.
    neg_l1 = jax.lax.dot_general(
        g_ref[...], d,
        dimension_numbers=(((2,), (2,)), ((0,), (0,))),
        preferred_element_type=jnp.float32)              # [TI, B, TJ]

    # exp / i-reduction / accumulation, all lane-dense (TJ on lanes).
    acc_ref[...] += jnp.exp(neg_l1).sum(axis=0)          # [B, TJ]

    @pl.when(i == pl.num_programs(1) - 1)
    def _():
        # Subtract the exact self-comparison term exp(0) = 1 and emit this j-block.
        out_ref[0] = (acc_ref[...] - 1.0).astype(out_ref.dtype)


def _largest_tile(n, target):
    """Largest t <= min(target, n) with n % t == 0 and (t % 8 == 0 or t == n)."""
    if n <= target:
        return n
    t = (target // 8) * 8
    while t >= 8:
        if n % t == 0:
            return t
        t -= 8
    return n  # fall back to a single (full-dim) block


def _pick_config(N, BC, tile_i, tile_j):
    """Generation-aware tile sizes and VMEM budget."""
    mib = 1024 * 1024
    try:
        phys_vmem = pltpu.get_tpu_info().vmem_capacity_bytes
    except Exception:
        phys_vmem = 64 * mib  # conservative (v7x-class per-core VMEM)
    if phys_vmem <= 64 * mib:
        # v7x: 64 MiB VMEM / TensorCore, 2 TCs per chip -> keep >= 2 j-blocks so
        # the "parallel" j axis can actually shard across both cores.
        ti_target = 128
        tj_target = min(128, max(8, N // 2))
        cap = 48 * mib
    else:
        # v5e / v6e: 128 MiB VMEM, single TensorCore.
        ti_target, tj_target, cap = 256, 128, 80 * mib
    if tile_i is None:
        tile_i = _largest_tile(N, ti_target)
    if tile_j is None:
        tile_j = _largest_tile(N, tj_target)
    assert N % tile_i == 0 and N % tile_j == 0
    assert tile_i % 8 == 0 or tile_i == N
    assert tile_j % 8 == 0 or tile_j == N
    # Live f32 pairwise block is [tile_i, tile_j, BC]; leave room for the broadcast
    # operands, double-buffered inputs and compiler temps.
    d_bytes = tile_i * tile_j * BC * 4
    vmem_limit = int(min(cap, max(32 * mib, 4 * d_bytes + 16 * mib)))
    return tile_i, tile_j, vmem_limit


def minibatch_discrimination(x, T, *, tile_i=None, tile_j=None):
    """x: [N, A] float32, T: [A, B, C] float32 -> [N, A+B] float32."""
    N, A = x.shape
    A2, B, C = T.shape
    assert A == A2
    BC = B * C

    tile_i, tile_j, vmem_limit = _pick_config(N, BC, tile_i, tile_j)

    # Hoisted out of the pairwise stage: M = x @ T.view(A, -1)   (tiny, plain XLA).
    t_flat = T.reshape(A, BC)
    M = jnp.dot(x, t_flat, precision=jax.lax.Precision.HIGHEST)     # [N, BC]

    # (-1/0) grouping matrix: row b has -1 on the C lanes of feature b, so the in-kernel
    # batched matmul emits -L1 directly (negation folded into the constant).  Broadcast
    # over the i-tile so it doubles as the batched-matmul LHS; constant index_map keeps
    # it VMEM-resident with zero per-step cost.
    feat_of = jnp.arange(BC, dtype=jnp.int32) // C
    gneg = -(feat_of[None, :] == jnp.arange(B, dtype=jnp.int32)[:, None]).astype(jnp.float32)
    gneg_b = jnp.broadcast_to(gneg, (tile_i, B, BC))                 # [tile_i, B, BC]

    n_jblk = N // tile_j
    feats3 = pl.pallas_call(
        _mbd_kernel,
        out_shape=jax.ShapeDtypeStruct((n_jblk, B, tile_j), jnp.float32),
        grid=(n_jblk, N // tile_i),
        in_specs=[
            pl.BlockSpec((tile_j, BC), lambda j, i: (j, 0)),         # M rows for out block
            pl.BlockSpec((tile_i, BC), lambda j, i: (i, 0)),         # M rows for "others"
            pl.BlockSpec((tile_i, B, BC), lambda j, i: (0, 0, 0)),   # grouping matrix, resident
        ],
        out_specs=pl.BlockSpec((1, B, tile_j), lambda j, i: (j, 0, 0)),
        scratch_shapes=[pltpu.VMEM((B, tile_j), jnp.float32)],
        compiler_params=pltpu.CompilerParams(
            # j-blocks independent (megacore-parallel on v7x); i is the reduction.
            dimension_semantics=("parallel", "arbitrary"),
            vmem_limit_bytes=vmem_limit,
        ),
    )(M, M, gneg_b)

    # Lane-dense kernel output [n_jblk, B, tile_j] -> [N, B]; concat is plain XLA.
    feats = feats3.transpose(0, 2, 1).reshape(N, B)
    # TODO(synk): optional v6e/v7x follow-up: bf16 abs-diff / grouping matmul (needs a
    # relaxed tolerance); skipped to keep exact-f32-class numerics on all generations.
    return jnp.concatenate([x, feats], axis=1)


def _reference(x, T):
    # Pure-JAX transcription of the PyTorch forward for verification.
    A, B, C = T.shape
    M = jnp.dot(x, T.reshape(A, B * C), precision=jax.lax.Precision.HIGHEST)
    M = M.reshape(-1, B, C)[None]            # [1, N, B, C]
    M_t = jnp.transpose(M, (1, 0, 2, 3))     # [N, 1, B, C]
    out = jnp.sum(jnp.exp(-jnp.abs(M - M_t).sum(3)), axis=0) - 1.0
    return jnp.concatenate([x, out], axis=1)


if __name__ == "__main__":
    # Small shapes consistent with the module: batch=16, input_features=32,
    # output_features=8, hidden_features=16.  Explicit tiles of 8 exercise the full
    # 2x2 grid (accumulator init / accumulate / finalize + parallel j-blocks).
    N, A, B, C = 16, 32, 8, 16
    key = jax.random.PRNGKey(0)
    kx, kt = jax.random.split(key)
    # Scaled so exp(-L1) is O(0.1) and the comparison is numerically meaningful.
    x = 0.25 * jax.random.normal(kx, (N, A), dtype=jnp.float32)
    T = 0.10 * jax.random.normal(kt, (A, B, C), dtype=jnp.float32)

    ref = _reference(x, T)

    out = minibatch_discrimination(x, T, tile_i=8, tile_j=8)
    out = jax.block_until_ready(out)
    assert out.shape == (N, A + B)
    assert jnp.allclose(out, ref, atol=1e-4, rtol=1e-4), float(jnp.max(jnp.abs(out - ref)))

    # Also exercise the generation-aware default-tile path (single-block grid at N=16).
    out2 = jax.block_until_ready(minibatch_discrimination(x, T))
    assert jnp.allclose(out2, ref, atol=1e-4, rtol=1e-4), float(jnp.max(jnp.abs(out2 - ref)))

    print("KERNEL_OK")
</pallas_src>

<mosaic_0001>
module attributes {stable_mosaic.version = 11 : i64} {
  func.func @_mbd_kernel(%arg0: i32, %arg1: i32, %arg2: memref<8x128xf32, #tpu.memory_space<vmem>>, %arg3: memref<8x128xf32, #tpu.memory_space<vmem>>, %arg4: memref<8x8x128xf32, #tpu.memory_space<vmem>>, %arg5: memref<1x8x8xf32, #tpu.memory_space<vmem>>, %arg6: memref<8x8xf32, #tpu.memory_space<vmem>>) attributes {dimension_semantics = [#tpu.dimension_semantics<parallel>, #tpu.dimension_semantics<arbitrary>], iteration_bounds = array<i64: 2, 2>, scalar_prefetch = 0 : i64, scratch_operands = 1 : i64, tpu.core_type = #tpu.core_type<tc>, window_params = [{transform_indices = @transform_0, window_bounds = array<i64: 8, 128>}, {transform_indices = @transform_1, window_bounds = array<i64: 8, 128>}, {pipeline_mode = #tpu.pipeline_mode<synchronous>, transform_indices = @transform_2, window_bounds = array<i64: 8, 8, 128>}, {transform_indices = @transform_3, window_bounds = array<i64: 1, 8, 8>}]} {
    %c0_i32 = arith.constant 0 : i32
    %0 = arith.cmpi eq, %arg1, %c0_i32 : i32
    %1 = arith.extui %0 : i1 to i32
    %c0_i32_0 = arith.constant 0 : i32
    %2 = arith.cmpi ne, %1, %c0_i32_0 : i32
    scf.if %2 {
      %cst_13 = arith.constant 0.000000e+00 : f32
      %21 = vector.broadcast %cst_13 : f32 to vector<8x8xf32>
      %c0_14 = arith.constant 0 : index
      %c0_15 = arith.constant 0 : index
      %22 = vector.load %arg6[%c0_14, %c0_15] : memref<8x8xf32, #tpu.memory_space<vmem>>, vector<8x8xf32>
      tpu.vector_store %arg6[%c0_14, %c0_15], %21 {strides = array<i32>} : memref<8x8xf32, #tpu.memory_space<vmem>>, vector<8x8xf32>,
    } else {
    }
    %c0 = arith.constant 0 : index
    %c0_1 = arith.constant 0 : index
    %3 = vector.load %arg2[%c0, %c0_1] : memref<8x128xf32, #tpu.memory_space<vmem>>, vector<8x128xf32>
    %c0_2 = arith.constant 0 : index
    %c0_3 = arith.constant 0 : index
    %4 = vector.load %arg3[%c0_2, %c0_3] : memref<8x128xf32, #tpu.memory_space<vmem>>, vector<8x128xf32>
    %5 = vector.shape_cast %4 : vector<8x128xf32> to vector<8x1x128xf32>
    %6 = vector.shape_cast %3 : vector<8x128xf32> to vector<1x8x128xf32>
    %7 = vector.broadcast %5 : vector<8x1x128xf32> to vector<8x8x128xf32>
    %8 = vector.broadcast %6 : vector<1x8x128xf32> to vector<8x8x128xf32>
    %9 = arith.subf %7, %8 : vector<8x8x128xf32>
    %10 = math.absf %9 : vector<8x8x128xf32>
    %c0_4 = arith.constant 0 : index
    %c0_5 = arith.constant 0 : index
    %c0_6 = arith.constant 0 : index
    %11 = vector.load %arg4[%c0_4, %c0_5, %c0_6] : memref<8x8x128xf32, #tpu.memory_space<vmem>>, vector<8x8x128xf32>
    %cst = arith.constant dense<0.000000e+00> : vector<8x8x8xf32>
    %12 = tpu.matmul %11, %10, %cst {dimension_numbers = #tpu.dot_dimension_numbers<[2], [2], [1], [1], [0, 0, 0, 1, 1, 1], [0], [0]>} : vector<8x8x128xf32>, vector<8x8x128xf32>, vector<8x8x8xf32> -> vector<8x8x8xf32>
    %c0_7 = arith.constant 0 : index
    %c0_8 = arith.constant 0 : index
    %13 = vector.load %arg6[%c0_7, %c0_8] : memref<8x8xf32, #tpu.memory_space<vmem>>, vector<8x8xf32>
    %14 = math.exp %12 : vector<8x8x8xf32>
    %cst_9 = arith.constant dense<0.000000e+00> : vector<8x8xf32>
    %15 = vector.multi_reduction <add>, %14, %cst_9 [0] : vector<8x8x8xf32> to vector<8x8xf32>
    %16 = arith.addf %13, %15 : vector<8x8xf32>
    %c0_10 = arith.constant 0 : index
    %c0_11 = arith.constant 0 : index
    %17 = vector.load %arg6[%c0_10, %c0_11] : memref<8x8xf32, #tpu.memory_space<vmem>>, vector<8x8xf32>
    tpu.vector_store %arg6[%c0_10, %c0_11], %16 {strides = array<i32>} : memref<8x8xf32, #tpu.memory_space<vmem>>, vector<8x8xf32>,
    %c1_i32 = arith.constant 1 : i32
    %18 = arith.cmpi eq, %arg1, %c1_i32 : i32
    %19 = arith.extui %18 : i1 to i32
    %c0_i32_12 = arith.constant 0 : i32
    %20 = arith.cmpi ne, %19, %c0_i32_12 : i32
    scf.if %20 {
      %c0_13 = arith.constant 0 : index
      %c0_14 = arith.constant 0 : index
      %21 = vector.load %arg6[%c0_13, %c0_14] : memref<8x8xf32, #tpu.memory_space<vmem>>, vector<8x8xf32>
      %cst_15 = arith.constant 1.000000e+00 : f32
      %22 = vector.broadcast %cst_15 : f32 to vector<8x8xf32>
      %23 = arith.subf %21, %22 : vector<8x8xf32>
      %c0_16 = arith.constant 0 : index
      %c0_17 = arith.constant 0 : index
      %c0_18 = arith.constant 0 : index
      %24 = vector.load %arg5[%c0_16, %c0_17, %c0_18] : memref<1x8x8xf32, #tpu.memory_space<vmem>>, vector<1x8x8xf32>
      %25 = vector.shape_cast %24 : vector<1x8x8xf32> to vector<8x8xf32>
      %26 = vector.shape_cast %23 : vector<8x8xf32> to vector<1x8x8xf32>
      tpu.vector_store %arg5[%c0_16, %c0_17, %c0_18], %26 {strides = array<i32>} : memref<1x8x8xf32, #tpu.memory_space<vmem>>, vector<1x8x8xf32>,
    } else {
    }
    return
  }
  func.func @transform_0(%arg0: i32, %arg1: i32) -> (i32, i32) {
    %c0_i32 = arith.constant 0 : i32
    %c0_i32_0 = arith.constant 0 : i32
    return %arg0, %c0_i32 : i32, i32
  }
  func.func @transform_1(%arg0: i32, %arg1: i32) -> (i32, i32) {
    %c0_i32 = arith.constant 0 : i32
    %c0_i32_0 = arith.constant 0 : i32
    return %arg1, %c0_i32 : i32, i32
  }
  func.func @transform_2(%arg0: i32, %arg1: i32) -> (i32, i32, i32) {
    %c0_i32 = arith.constant 0 : i32
    %c0_i32_0 = arith.constant 0 : i32
    %c0_i32_1 = arith.constant 0 : i32
    %c0_i32_2 = arith.constant 0 : i32
    return %c0_i32, %c0_i32_0, %c0_i32_1 : i32, i32, i32
  }
  func.func @transform_3(%arg0: i32, %arg1: i32) -> (i32, i32, i32) {
    %c0_i32 = arith.constant 0 : i32
    %c0_i32_0 = arith.constant 0 : i32
    %c0_i32_1 = arith.constant 0 : i32
    return %arg0, %c0_i32, %c0_i32_0 : i32, i32, i32
  }
}

</mosaic_0001>

<bundles_post_ra>
// kernel: tpu_custom_call.1
= control target key start
LH: loop header
LB: loop body
LE: loop exit
PB: predicated region body
PF: predicated region fallthrough
CT: control target
= control target key end

     0   :  { %s1928_s0 = inlined_call_operand.hbm [shape: f32[16,128], index: 0, kind: input, shape index: {}]   ;;  %s1929_s1 = inlined_call_operand.hbm [shape: f32[16,128], index: 1, kind: input, shape index: {}]   ;;  %s1930_s2 = inlined_call_operand.hbm [shape: f32[8,8,128], index: 2, kind: input, shape index: {}]   ;;  %s1931_s3 = inlined_call_operand.hbm [shape: f32[2,8,8], index: 3, kind: output, shape index: {}]  }
   0x1   :  { %1941 = sst [smem:[#allocation17_spill]] %s1928_s0 }
   0x2   :  { %1942 = sst [smem:[#allocation18_spill]] %s1930_s2 }
   0x3   :  { %8 = vsyncpa [#allocation4], 0 }
   0x4   :  { %10 = vsyncpa [#allocation4 + $0x1], 0 }
   0x5   :  { %11 = vsyncpa [#allocation7], 0 }
   0x6   :  { %13 = vsyncpa [#allocation7 + $0x1], 0 }
   0x7   :  { %14 = vsyncpa [#allocation5], 0 }
   0x8   :  { %16 = vsyncpa [#allocation5 + $0x1], 0  ;;  %s1568_s12 = smov 0   ;;  %s1570_s13 = smov 0  }
   0x9   :  { %s1572_s14 = smov 0   ;;  %s1574_s15 = smov 0  }
   0xa   :  { %s1576_s16 = smov 0   ;;  %s1578_s17 = smov 0  }
   0xb   :  { %s1580_s18 = smov 0   ;;  %s1582_s19 = smov 0  }
   0xc   :  { %s1584_s20 = smov 0   ;;  %s1586_s21 = smov 0  }
   0xd   :  { %s1588_s22 = smov 0  }
   0xe LB: > { %1943 = sst [smem:[#allocation14_spill]] %s1508_s15  ;;  %s1624_s23 = sadd.s32 4294967295, %s1536_s22   ;;  %s1536_s22 = sphi %s1588_s22, %s22_s22   ;;  %s1532_s21 = sphi %s1586_s21, %s1981_s21   ;;  %s1528_s20 = sphi %s1584_s20, %s1980_s20   ;;  %s1524_s19 = sphi %s1582_s19, %s1979_s19   ;;  %s1520_s18 = sphi %s1580_s18, %s1978_s18   ;;  %s1516_s17 = sphi %s1578_s17, %s1977_s17   ;;  %s1512_s16 = sphi %s1576_s16, %s1976_s16   ;;  %s1508_s15 = sphi %s1574_s15, %s1975_s15   ;;  %s1504_s14 = sphi %s1572_s14, %s1974_s14   ;;  %s1500_s13 = sphi %s1570_s13, %s1973_s13   ;;  %s1496_s12 = sphi %s1568_s12, %s1972_s12  }
   0xf   : > { %p1102_p0 = scmp.ge.s32.totalorder %s1536_s22, 1  ;;  %p1932_p1 = scmp.eq.s32.totalorder %s1624_s23, 0 }
  0x10   : > { %p138_p2 = scmp.lt.s32.totalorder %s1536_s22, 5  ;;  %s1538_s25 = smov [#allocation8]  }
  0x11   : > { %s150_s26 = sshll.u32 %s1538_s25, 4  ;;  %s1946_s2 = sld [smem:[#allocation18_spill]]  ;;  %s151_s26 = int_to_ptr.vmem [resolvable:$true] %s150_s26 }
  0x12   : > { %p1629_p3 = pnand %p1102_p0, %p138_p2 }
  0x14   : > { %s1944_s24 = scalar_select %p1629_p3, 1, 0 }
  0x15   : > { %p1187_p4 = pneg %p1629_p3 }
  0x17   : > { %p1637_p5 = pnand %p1187_p4, %p1932_p1  ;;  %s1318_s30 = scalar_lea.hbm %s1946_s2, 1024 }
  0x18   : > { %p1319_p6 = scmp.ne.s32.totalorder %s1946_s2, %s1318_s30  ;;  %p1325_p10 = scmp.lt.u32.totalorder %s1318_s30, %s1946_s2 }
  0x19   : > { %p1320_p7 = pneg %p1637_p5 }
  0x1b   : > { %p1321_p8 = pnand %p1320_p7, %p1319_p6 }
  0x1d   : > { %p1322_p9 = pneg %p1321_p8 }
  0x1f   : > { %p1327_p11 = pnand %p1325_p10, %p1322_p9 }
  0x21   : > { %1330 = shalt.err (!%p1327_p11)
}
  0x22   : > { %s1331_s8 = scalar_lea.vmem %s151_s26, 1024  ;;  %p1339_p2 = scmp.lt.s32.totalorder %s151_s26, %s151_s26 }
  0x23   : > { %p1332_p12 = scmp.ne.s32.totalorder %s151_s26, %s1331_s8  ;;  %p1340_p4 = scmp.lt.s32.totalorder %s1331_s8, %s1331_s8 }
  0x25   : > { %p1334_p13 = pnand %p1332_p12, %p1320_p7  ;;  %p1341_p1 = por %p1340_p4, %p1339_p2 }
  0x27   : > { %p1335_p0 = pneg %p1334_p13 }
  0x29   : > { %p1342_p3 = pnand %p1341_p1, %p1335_p0 }
  0x2b   : > { %1345 = shalt.err (!%p1342_p3)
}
  0x2c   : > { %s1539_s9 = smov 128   ;;  %s1540_s10 = smov 8  }
  0x2d   : > { %1190 = dma.hbm_to_vmem [thread:$0]  (!%p1637_p5), %s1946_s2, 1024, %s151_s26, [#allocation7], %s1539_s9, %s1539_s9, %s1540_s10  }
  0x2e   : > { %s1101_s28 = sadd.s32 4294967294, %s1536_s22   ;;  %p48_p1 = scmp.ne.s32.totalorder %s1516_s17, %s1512_s16 }
  0x2f   : > { %p1935_p3 = scmp.eq.s32.totalorder %s1536_s22, 0  ;;  %p54_p6 = scmp.ne.s32.totalorder %s1512_s16, %s1508_s15 }
  0x30   : > { %p125_p7 = scmp.eq.s32.totalorder %s1624_s23, 3  ;;  %p131_p9 = scmp.eq.s32.totalorder %s1101_s28, 3 }
  0x31   : > { %p50_p8 = por %p1935_p3, %p48_p1  ;;  %p1947_p10 = scmp.eq.s32.totalorder %s1624_s23, 0 }
  0x32   : > { %p1674_p12 = por %p125_p7, %p48_p1  ;;  %p1678_p5 = por %p131_p9, %p54_p6 }
  0x33   : > { %p1670_p11 = por %p1947_p10, %p54_p6  ;;  %p1934_p13 = scmp.lt.s32.totalorder %s1536_s22, 4 }
  0x34   : > { %s1949_s27 = scalar_select %p1674_p12, 1, 0 }
  0x35   : > { %s1950_s26 = scalar_select %p1678_p5, 1, 0 }
  0x36   : > { %s164_s5 = sand.u32 1, %s1516_s17   ;;  %s1106_s6 = sshll.u32 %s1532_s21, 7 }
  0x37   : > { %1951 = sst [smem:[#allocation15_spill]] %s1950_s26  ;;  %s1105_s7 = sshll.u32 %s164_s5, 3 }
  0x38   : > { %s1952_s0 = sld [smem:[#allocation17_spill]]  ;;  %s168_s11 = scalar_lea.vmem [#allocation3], %s1105_s7 }
  0x39   : > { %s175_s25 = sshll.u32 %s168_s11, 4  ;;  %p1692_p0 = pnand %p1934_p13, %p50_p8  ;;  %s1696_s25 = int_to_ptr.vmem [resolvable:$true] %s175_s25 }
  0x3a   : > { %s165_s30 = scalar_lea.sflag [#allocation4], %s164_s5 }
  0x3b   : > { %p1348_p4 = pneg %p1692_p0 }
  0x3e   : > { %s1688_s10 = scalar_lea.hbm %s1952_s0, %s1106_s6  ;;  %s1351_s8 = scalar_lea.hbm %s1952_s0, 256 }
  0x3f   : > { %s1346_s29 = scalar_lea.hbm %s1688_s10, 128  ;;  %p1352_p7 = scmp.lt.u32.totalorder %s1688_s10, %s1952_s0 }
  0x40   : > { %p1347_p2 = scmp.ne.s32.totalorder %s1688_s10, %s1346_s29  ;;  %p1353_p8 = scmp.lt.u32.totalorder %s1351_s8, %s1346_s29 }
  0x41   : > { %p1355_p10 = scmp.lt.u32.totalorder %s1346_s29, %s1688_s10 }
  0x42   : > { %p1349_p1 = pnand %p1348_p4, %p1347_p2  ;;  %p1354_p9 = por %p1353_p8, %p1352_p7 }
  0x44   : > { %p1350_p6 = pneg %p1349_p1  ;;  %p1356_p13 = por %p1355_p10, %p1354_p9 }
  0x46   : > { %p1357_p3 = pnand %p1356_p13, %p1350_p6 }
  0x48   : > { %1360 = shalt.err (!%p1357_p3)
}
  0x49   : > { %s1361_s5 = scalar_lea.vmem %s1696_s25, 128  ;;  %s1541_s6 = smov [#allocation3]  }
  0x4a   : > { %p1362_p2 = scmp.ne.s32.totalorder %s1696_s25, %s1361_s5  ;;  %s1366_s7 = sshll.u32 %s1541_s6, 4  ;;  %s1367_s7 = int_to_ptr.vmem [resolvable:$false] %s1366_s7 }
  0x4b   : > { %s1368_s9 = scalar_lea.vmem %s1367_s7, 256  ;;  %p1369_p12 = scmp.lt.s32.totalorder %s1696_s25, %s1367_s7 }
  0x4c   : > { %p1364_p1 = pnand %p1362_p2, %p1348_p4  ;;  %p1370_p7 = scmp.lt.s32.totalorder %s1368_s9, %s1361_s5 }
  0x4e   : > { %p1365_p5 = pneg %p1364_p1  ;;  %p1371_p8 = por %p1370_p7, %p1369_p12 }
  0x50   : > { %p1372_p9 = pnand %p1371_p8, %p1365_p5 }
  0x52   : > { %1375 = shalt.err (!%p1372_p9)
}
  0x53   : > { %1194 = dma.hbm_to_vmem [thread:$0]  (!%p1692_p0), %s1688_s10, 128, %s1696_s25, %s165_s30  }
  0x54   : > { %s31_s29 = sadd.s32 1, %s1528_s20  ;;  %s67_s28 = sadd.s32 1, %s1504_s14 }
  0x55   : > { %p32_p3 = scmp.ge.s32.totalorder %s31_s29, 2  ;;  %p74_p12 = scmp.ne.s32.totalorder %s1504_s14, %s1500_s13 }
  0x56   : > { %p80_p5 = scmp.ne.s32.totalorder %s1500_s13, %s1496_s12  ;;  %s182_s8 = sand.u32 1, %s1536_s22  }
  0x57   : > { %s1983_s29 = smov (%p32_p3, %s31_s29), 0  ;;  %s1955_s11 = sadd.s32 1, %s1532_s21 }
  0x58   : > { %1954 = sst [smem:[#allocation16_spill]] %s1983_s29  ;;  %s1985_s11 = smov (!%p32_p3, %s1955_s11), %s1532_s21 }
  0x59   : > { %s64_s5 = ssub.s32 %s1528_s20, %s1983_s29  ;;  %p1956_p13 = scmp.eq.s32.totalorder %s1536_s22, 0 }
  0x5a   : > { %p36_p0 = scmp.ge.s32.totalorder %s1985_s11, 2  ;;  %p65_p6 = scmp.eq.s32.totalorder %s64_s5, 0 }
  0x5b   : > { %p1739_p4 = por %p74_p12, %p1956_p13  ;;  %p1958_p10 = scmp.eq.s32.totalorder %s1624_s23, 0 }
  0x5c   : > { %s1987_s11 = smov (%p36_p0, %s1985_s11), 0  ;;  %s184_s6 = sand.u32 1, %s1504_s14  }
  0x5d   : > { %p1745_p2 = por %p80_p5, %p1958_p10  ;;  %s38_s25 = ssub.s32 %s1532_s21, %s1987_s11 }
  0x5e   : > { %s1752_s10 = scalar_select %p65_p6, %s1504_s14, %s67_s28  }
  0x5f   : > { %s1959_s12 = scalar_select %p1745_p2, 1, 0 }
  0x60   : > { %p39_p1 = scmp.eq.s32.totalorder %s38_s25, 0  ;;  %s1107_s7 = sshll.u32 %s184_s6, 3 }
  0x61   : > { %s1108_s9 = sshll.u32 %s1528_s20, 7  ;;  %s1960_s0 = sadd.s32 1, %s1516_s17 }
  0x62   : > { %s1761_s2 = scalar_select %p39_p1, %s1516_s17, %s1960_s0  }
  0x63   : > { %s1766_s26 = scalar_lea.hbm %s1929_s1, %s1108_s9  ;;  %s186_s15 = scalar_lea.vmem [#allocation6], %s1107_s7 }
  0x64   : > { %s193_s28 = sshll.u32 %s186_s15, 4  ;;  %p1961_p7 = scmp.lt.s32.totalorder %s1536_s22, 4  ;;  %s1768_s28 = int_to_ptr.vmem [resolvable:$true] %s193_s28 }
  0x65   : > { %s183_s0 = scalar_lea.sflag [#allocation7], %s182_s8  ;;  %s1376_s29 = scalar_lea.hbm %s1766_s26, 128 }
  0x66   : > { %p1774_p8 = pnand %p1961_p7, %p1739_p4  ;;  %p1377_p9 = scmp.ne.s32.totalorder %s1766_s26, %s1376_s29 }
  0x67   : > { %s1381_s30 = scalar_lea.hbm %s1929_s1, 256  ;;  %p1382_p13 = scmp.lt.u32.totalorder %s1766_s26, %s1929_s1 }
  0x68   : > { %p1378_p3 = pneg %p1774_p8  ;;  %p1383_p4 = scmp.lt.u32.totalorder %s1381_s30, %s1376_s29 }
  0x69   : > { %p1385_p6 = scmp.lt.u32.totalorder %s1376_s29, %s1766_s26 }
  0x6a   : > { %p1379_p12 = pnand %p1378_p3, %p1377_p9  ;;  %p1384_p0 = por %p1383_p4, %p1382_p13 }
  0x6c   : > { %p1380_p5 = pneg %p1379_p12  ;;  %p1386_p10 = por %p1385_p6, %p1384_p0 }
  0x6e   : > { %p1387_p1 = pnand %p1386_p10, %p1380_p5 }
  0x70   : > { %1390 = shalt.err (!%p1387_p1)
}
  0x71   : > { %s1391_s8 = scalar_lea.vmem %s1768_s28, 128  ;;  %s1542_s5 = smov [#allocation6]  }
  0x72   : > { %p1392_p7 = scmp.ne.s32.totalorder %s1768_s28, %s1391_s8  ;;  %s1396_s15 = sshll.u32 %s1542_s5, 4  ;;  %s1397_s15 = int_to_ptr.vmem [resolvable:$false] %s1396_s15 }
  0x73   : > { %s1398_s6 = scalar_lea.vmem %s1397_s15, 256  ;;  %p1399_p2 = scmp.lt.s32.totalorder %s1768_s28, %s1397_s15 }
  0x74   : > { %p1394_p9 = pnand %p1392_p7, %p1378_p3  ;;  %p1400_p13 = scmp.lt.s32.totalorder %s1398_s6, %s1391_s8 }
  0x76   : > { %p1395_p12 = pneg %p1394_p9  ;;  %p1401_p4 = por %p1400_p13, %p1399_p2 }
  0x78   : > { %p1402_p0 = pnand %p1401_p4, %p1395_p12 }
  0x7a   : > { %1405 = shalt.err (!%p1402_p0)
}
  0x7b   : > { %1197 = dma.hbm_to_vmem [thread:$0]  (!%p1774_p8), %s1766_s26, 128, %s1768_s28, %s183_s0  }
  0x7c   : > { %p1963_p5 = scmp.ne.s32.totalorder %s1944_s24, 0 }
  0x7d   : > { %s1806_s29 = sand.u32 (!%p1963_p5), 1, %s1512_s16  }
  0x7e   : > { %202 = sbr.rel (%p1963_p5) target bundleno = 451 (0x1c3), region = 32  ;;  %s1110_s30 = sshll.u32 (!%p1963_p5), %s1806_s29, 3 }
  0x7f   : > { %s205_s7 = scalar_lea.sflag (!%p1963_p5), [#allocation4], %s1806_s29  ;;  %s1810_s9 = scalar_lea.vmem (!%p1963_p5), [#allocation3], %s1110_s30 }
  0x85   : > { %1479 = dma.done.wait (%p1670_p11), %s205_s7, 128  }
  0x86   : > { %1481 = vsyncadd (%p1670_p11), %s205_s7, 4294967168  ;;  %s213_s24 = sand.u32 1, %s1624_s23   ;;  %s215_s26 = sand.u32 1, %s1500_s13  }
  0x87   : > { %s1111_s28 = sshll.u32 %s215_s26, 3  ;;  %s214_s25 = scalar_lea.sflag [#allocation7], %s213_s24 }
  0x88   : > { %s217_s0 = scalar_lea.vmem [#allocation6], %s1111_s28  ;;  %p1964_p2 = scmp.ne.s32.totalorder %s1959_s12, 0 }
  0x8a   : > { %1483 = dma.done.wait (%p1964_p2), %s214_s25, 128  }
  0x8b   : > { %1485 = vsyncadd (%p1964_p2), %s214_s25, 4294967168  ;;  %p1965_p8 = scmp.eq.s32.totalorder %s1624_s23, 0 }
  0x8d   : > { %1487 = dma.done.wait (%p1965_p8), [#allocation7], 1024   ;;  %p1966_p3 = pmov %p1965_p8 }
  0x8e   : > { %s1826_s4 = scalar_lea.vmem [#allocation9], %s1110_s30  ;;  %p1114_p11 = scmp.ne.s32.totalorder %s1520_s18, 0 }
  0x8f   : > { %1489 = vsyncadd (%p1966_p3), [#allocation7], 4294966272  ;;  %vm253_vm0 = vcmask (!%p1114_p11), 64512   ;;  %v1543_v0 = vmov (!%p1114_p11), 0.0  }
  0x90   : > { %252 = sbr.rel (%p1114_p11) target bundleno = 151 (0x97), region = 48  ;;  %254 = vst.msk [vmem:[#allocation2] sm:$0xff] (!%p1114_p11), %vm253_vm0, %v1543_v0 }
  0x97 PF: > { %v262_v1 = vlaneseq  ;;  %v1544_v2 = vmov 0.0   ;;  %v1545_v3 = vmov 1966171168   ;;  %v256_v5 = vld [vmem:[%s217_s0] sm:$0xff]  ;;  %vm1546_vm1 = vmmov 0   ;;  %v255_v17 = vld [vmem:[%s1810_s9] sm:$0xff] }
  0x98   : > { %1137 = vmatprep.subr.mxu0 %v1544_v2  ;;  %v260_v4 = vunpack.c.l.s4 %v1545_v3  ;;  %1142 = vmatprep.subr.mxu1 %v1544_v2  ;;  %v258_v7 = vcombine.high %v256_v5, %v256_v5  ;;  %v363_v36 = vld [vmem:[#allocation8] sm:$0xff]  ;;  %v364_v40 = vld [vmem:[#allocation8 + $0x8] sm:$0xff]  ;;  %v365_v44 = vld [vmem:[#allocation8 + $0x10] sm:$0xff]  ;;  %vm948_vm2 = vcmask 64512   ;;  %p1115_p6 = scmp.ne.s32.totalorder %s1520_s18, 1 }
  0x99   : > { %v263_v6 = vshrl.u32 %v262_v1, 7  ;;  %1139 = vmatprep.mubr.msk.f32.mxu0 %vm1546_vm1, %v1544_v2  ;;  %1144 = vmatprep.mubr.msk.f32.mxu1 %vm1546_vm1, %v1544_v2  ;;  %v366_v47 = vld [vmem:[#allocation8 + $0x18] sm:$0xff]  ;;  %v367_v50 = vld [vmem:[#allocation8 + $0x20] sm:$0xff]  ;;  %v368_v52 = vld [vmem:[#allocation8 + $0x28] sm:$0xff] }
  0x9a   : > { %v261_v8 = vunpack.c.0.s8 %v260_v4  ;;  %v369_v54 = vld [vmem:[#allocation8 + $0x30] sm:$0xff]  ;;  %v370_v55 = vld [vmem:[#allocation8 + $0x38] sm:$0xff] }
  0x9b   : > { %v309_v12 = vsub.s32 0, %v263_v6 }
  0x9c   : > { %v264_v9 = vsub.s32 %v261_v8, %v263_v6 }
  0x9e   : > { %v265_v10 = vrot.slane %v256_v5, %v264_v9  ;;  %v272_v11 = vrot.slane %v258_v7, %v264_v9 }
  0xa0   : > { %v281_v13 = vrot.slane %v265_v10, %v264_v9  ;;  %v273_v14 = vcombine.high %v265_v10, %v265_v10  ;;  %v288_v15 = vrot.slane %v272_v11, %v264_v9  ;;  %v274_v16 = vcombine.high %v272_v11, %v272_v11 }
  0xa2   : > { %v303_v18 = vcombine.high %v281_v13, %v281_v13  ;;  %v310_v19 = vrot.slane %v281_v13, %v309_v12  ;;  %v295_v20 = vrot.slane %v273_v14, %v264_v9  ;;  %v326_v21 = vrot.slane %v288_v15, %v309_v12 }
  0xa3   : > { %v302_v22 = vrot.slane %v274_v16, %v264_v9  ;;  %v304_v23 = vcombine.high %v288_v15, %v288_v15 }
  0xa4   : > { %v347_v24 = vsub.f32 %v310_v19, %v255_v17  ;;  %v305_v25 = vcombine.high %v295_v20, %v295_v20  ;;  %v314_v26 = vrot.slane %v295_v20, %v309_v12  ;;  %v318_v27 = vrot.slane %v303_v18, %v309_v12 }
  0xa5   : > { %v330_v28 = vrot.slane %v302_v22, %v309_v12  ;;  %v306_v29 = vcombine.high %v302_v22, %v302_v22  ;;  %v351_v34 = vsub.f32 %v326_v21, %v255_v17  ;;  %v334_v39 = vrot.slane %v304_v23, %v309_v12 }
  0xa6   : > { %v355_v30 = vand.u32 2147483647, %v347_v24  ;;  %v348_v31 = vsub.f32 %v314_v26, %v255_v17  ;;  %v349_v32 = vsub.f32 %v318_v27, %v255_v17  ;;  %v322_v33 = vrot.slane %v305_v25, %v309_v12 }
  0xa7   : > { %v352_v42 = vsub.f32 %v330_v28, %v255_v17  ;;  %v338_v43 = vrot.slane %v306_v29, %v309_v12  ;;  %v359_v45 = vand.u32 2147483647, %v351_v34  ;;  %v353_v46 = vsub.f32 %v334_v39, %v255_v17 }
  0xa8   : > { %1138 = vmatpush3.xpose.msra.mxu0 %v355_v30  ;;  %v356_v35 = vand.u32 2147483647, %v348_v31  ;;  %v357_v37 = vand.u32 2147483647, %v349_v32  ;;  %v350_v38 = vsub.f32 %v322_v33, %v255_v17 }
  0xa9   : > { %1147 = vmatprep.subr.mxu0 %v1544_v2  ;;  %v360_v48 = vand.u32 2147483647, %v352_v42  ;;  %v354_v49 = vsub.f32 %v338_v43, %v255_v17  ;;  %v361_v51 = vand.u32 2147483647, %v353_v46 }
  0xaa   : > { %1143 = vmatpush3.xpose.msra.mxu1 %v356_v35  ;;  %v358_v41 = vand.u32 2147483647, %v350_v38 }
  0xab   : > { %1140 = vmatmul.mubr.f32.vlgmr.msra.gmra.mrb[0].mxu0 %v363_v36  ;;  %1152 = vmatprep.subr.mxu1 %v1544_v2  ;;  %v362_v53 = vand.u32 2147483647, %v354_v49 }
  0xac   : > { %1148 = vmatpush3.xpose.msra.mxu0 %v357_v37  ;;  %1149 = vmatprep.mubr.msk.f32.mxu0 %vm1546_vm1, %v1544_v2  ;;  %v931_v37 = vld [vmem:[#allocation2] sm:$0xff] }
  0xad   : > { %1145 = vmatmul.mubr.f32.vlgmr.msra.gmra.mrb[0].mxu1 %v364_v40  ;;  %1157 = vmatprep.subr.mxu0 %v1544_v2 }
  0xae   : > { %1153 = vmatpush3.xpose.msra.mxu1 %v358_v41  ;;  %1154 = vmatprep.mubr.msk.f32.mxu1 %vm1546_vm1, %v1544_v2 }
  0xaf   : > { %1150 = vmatmul.mubr.f32.vlgmr.msra.gmra.mrb[2].mxu0 %v365_v44  ;;  %1162 = vmatprep.subr.mxu1 %v1544_v2 }
  0xb0   : > { %1158 = vmatpush3.xpose.msra.mxu0 %v359_v45  ;;  %1159 = vmatprep.mubr.msk.f32.mxu0 %vm1546_vm1, %v1544_v2 }
  0xb1   : > { %1155 = vmatmul.mubr.f32.vlgmr.msra.gmra.mrb[2].mxu1 %v366_v47  ;;  %1167 = vmatprep.subr.mxu0 %v1544_v2 }
  0xb2   : > { %1163 = vmatpush3.xpose.msra.mxu1 %v360_v48  ;;  %1164 = vmatprep.mubr.msk.f32.mxu1 %vm1546_vm1, %v1544_v2 }
  0xb3   : > { %1160 = vmatmul.mubr.f32.vlgmr.msra.gmra.mrb[4].mxu0 %v367_v50  ;;  %1172 = vmatprep.subr.mxu1 %v1544_v2 }
  0xb4   : > { %1168 = vmatpush3.xpose.msra.mxu0 %v361_v51  ;;  %1169 = vmatprep.mubr.msk.f32.mxu0 %vm1546_vm1, %v1544_v2 }
  0xb5   : > { %1165 = vmatmul.mubr.f32.vlgmr.msra.gmra.mrb[4].mxu1 %v368_v52 }
  0xb6   : > { %1173 = vmatpush3.xpose.msra.mxu1 %v362_v53  ;;  %1174 = vmatprep.mubr.msk.f32.mxu1 %vm1546_vm1, %v1544_v2 }
  0xb7   : > { %1170 = vmatmul.mubr.f32.vlgmr.msra.gmra.mrb[6].mxu0 %v369_v54 }
  0xb9   : > { %1175 = vmatmul.mubr.f32.vlgmr.msra.gmra.mrb[6].mxu1 %v370_v55 }
 0x17e   : > { %v437_v56 = vpop.f32.mrb[0].mxu0 }
 0x17f   : > { %v932_v57 = vmul.f32 1.442695, %v437_v56  ;;  %v1141_v58 = vpop.f32.mrb[1].mxu0 }
 0x180   : > { %v507_v59 = vpop.f32.mrb[0].mxu1 }
 0x181   : > { %1302 = vpow2.f32 %v932_v57  ;;  %v934_v60 = vmul.f32 1.442695, %v507_v59  ;;  %v1146_v61 = vpop.f32.mrb[1].mxu1 }
 0x182   : > { %v577_v62 = vpop.f32.mrb[2].mxu0 }
 0x183   : > { %1304 = vpow2.f32 %v934_v60  ;;  %v936_v63 = vmul.f32 1.442695, %v577_v62  ;;  %v1151_v0 = vpop.f32.mrb[3].mxu0 }
 0x184   : > { %v647_v1 = vpop.f32.mrb[2].mxu1 }
 0x185   : > { %1306 = vpow2.f32 %v936_v63  ;;  %v938_v3 = vmul.f32 1.442695, %v647_v1  ;;  %v1156_v4 = vpop.f32.mrb[3].mxu1 }
 0x186   : > { %v717_v5 = vpop.f32.mrb[4].mxu0 }
 0x187   : > { %1308 = vpow2.f32 %v938_v3  ;;  %v940_v2 = vmul.f32 1.442695, %v717_v5  ;;  %v1161_v6 = vpop.f32.mrb[5].mxu0 }
 0x188   : > { %v787_v7 = vpop.f32.mrb[4].mxu1 }
 0x189   : > { %1310 = vpow2.f32 %v940_v2  ;;  %v942_v8 = vmul.f32 1.442695, %v787_v7  ;;  %v1166_v9 = vpop.f32.mrb[5].mxu1 }
 0x18a   : > { %v857_v10 = vpop.f32.mrb[6].mxu0 }
 0x18b   : > { %v1303_v11 = vpop.eup %1302  ;;  %1312 = vpow2.f32 %v942_v8  ;;  %v944_v12 = vmul.f32 1.442695, %v857_v10  ;;  %v1171_v13 = vpop.f32.mrb[7].mxu0 }
 0x18c   : > { %v927_v14 = vpop.f32.mrb[6].mxu1  ;;  %v949_v18 = vsel %vm948_vm2, %v1303_v11, 0.0 }
 0x18d   : > { %v1305_v15 = vpop.eup %1304  ;;  %1314 = vpow2.f32 %v944_v12  ;;  %v946_v16 = vmul.f32 1.442695, %v927_v14  ;;  %v1176_v17 = vpop.f32.mrb[7].mxu1 }
 0x18e   : > { %v950_v19 = vsel %vm948_vm2, %v1305_v15, 0.0 }
 0x18f   : > { %v1307_v20 = vpop.eup %1306  ;;  %v951_v21 = vadd.f32 %v950_v19, %v949_v18  ;;  %1316 = vpow2.f32 %v946_v16 }
 0x190   : > { %v952_v22 = vsel %vm948_vm2, %v1307_v20, 0.0 }
 0x191   : > { %v1309_v23 = vpop.eup %1308  ;;  %v953_v24 = vadd.f32 %v952_v22, %v951_v21 }
 0x192   : > { %v954_v25 = vsel %vm948_vm2, %v1309_v23, 0.0 }
 0x193   : > { %v1311_v26 = vpop.eup %1310  ;;  %v955_v27 = vadd.f32 %v954_v25, %v953_v24 }
 0x194   : > { %v956_v28 = vsel %vm948_vm2, %v1311_v26, 0.0 }
 0x195   : > { %v1313_v29 = vpop.eup %1312  ;;  %v957_v30 = vadd.f32 %v956_v28, %v955_v27 }
 0x196   : > { %v958_v31 = vsel %vm948_vm2, %v1313_v29, 0.0 }
 0x197   : > { %v1315_v32 = vpop.eup %1314  ;;  %v959_v33 = vadd.f32 %v958_v31, %v957_v30 }
 0x198   : > { %v960_v34 = vsel %vm948_vm2, %v1315_v32, 0.0 }
 0x199   : > { %v1317_v35 = vpop.eup %1316  ;;  %v961_v36 = vadd.f32 %v960_v34, %v959_v33  ;;  %969 = sbr.rel (%p1115_p6) target bundleno = 426 (0x1aa), region = 52 }
 0x19a   : > { %v962_v38 = vsel %vm948_vm2, %v1317_v35, 0.0 }
 0x19b   : > { %v963_v39 = vadd.f32 %v962_v38, %v961_v36 }
 0x19d   : > { %v964_v40 = vadd.f32 %v963_v39, %v931_v37 }
 0x19f   : > { %965 = vst.msk [vmem:[#allocation2] sm:$0xff] %vm948_vm2, %v964_v40 }
 0x1a6   : > { %v970_v41 = vld [vmem:[#allocation2] sm:$0xff] }
 0x1a7   : > { %v1116_v42 = vadd.f32 -1.0, %v970_v41 }
 0x1a9   : > { %972 = vst.msk [vmem:[%s1826_s4] sm:$0xff] %vm948_vm2, %v1116_v42 }
 0x1aa PF: > { %s1118_s23 = sshll.u32 %s1524_s19, 7  ;;  %s987_s15 = sshll.u32 %s1826_s4, 4  ;;  %s988_s15 = int_to_ptr.vmem [resolvable:$true] %s987_s15 }
 0x1ab   : > { %s1870_s5 = scalar_lea.hbm %s1931_s3, %s1118_s23  ;;  %s974_s18 = scalar_lea.sflag [#allocation5], %s1806_s29 }
 0x1ac   : > { %s1406_s6 = scalar_lea.vmem %s988_s15, 128  ;;  %p1967_p1 = scmp.ne.s32.totalorder %s1949_s27, 0 }
 0x1ad   : > { %p1407_p10 = scmp.ne.s32.totalorder %s988_s15, %s1406_s6  ;;  %s1547_s30 = smov [#allocation9]  }
 0x1ae   : > { %s1410_s7 = sshll.u32 %s1547_s30, 4  ;;  %s1411_s7 = int_to_ptr.vmem [resolvable:$false] %s1410_s7 }
 0x1af   : > { %p1408_p7 = pnand %p1407_p10, %p1967_p1  ;;  %s1412_s9 = scalar_lea.vmem %s1411_s7, 256 }
 0x1b0   : > { %p1413_p12 = scmp.lt.s32.totalorder %s988_s15, %s1411_s7  ;;  %p1414_p13 = scmp.lt.s32.totalorder %s1412_s9, %s1406_s6 }
 0x1b1   : > { %p1409_p9 = pneg %p1408_p7 }
 0x1b2   : > { %p1415_p4 = por %p1414_p13, %p1413_p12 }
 0x1b4   : > { %p1416_p0 = pnand %p1415_p4, %p1409_p9 }
 0x1b6   : > { %1419 = shalt.err (!%p1416_p0)
}
 0x1b7   : > { %s1420_s19 = scalar_lea.hbm %s1870_s5, 128  ;;  %s1424_s26 = scalar_lea.hbm %s1931_s3, 256 }
 0x1b8   : > { %p1421_p5 = scmp.ne.s32.totalorder %s1870_s5, %s1420_s19  ;;  %p1425_p3 = scmp.lt.u32.totalorder %s1870_s5, %s1931_s3 }
 0x1b9   : > { %p1426_p11 = scmp.lt.u32.totalorder %s1424_s26, %s1420_s19  ;;  %p1428_p10 = scmp.lt.u32.totalorder %s1420_s19, %s1870_s5 }
 0x1ba   : > { %p1422_p2 = pnand %p1421_p5, %p1967_p1 }
 0x1bb   : > { %p1427_p6 = por %p1426_p11, %p1425_p3 }
 0x1bc   : > { %p1423_p8 = pneg %p1422_p2 }
 0x1bd   : > { %p1429_p7 = por %p1428_p10, %p1427_p6 }
 0x1bf   : > { %p1430_p9 = pnand %p1429_p7, %p1423_p8 }
 0x1c1   : > { %1433 = shalt.err (!%p1430_p9)
}
 0x1c2   : > { %1185 = dma.vmem_to_hbm [thread:$0]  (%p1967_p1), %s988_s15, 128, %s1870_s5, %s974_s18  }
 0x1c3 PF: > { %s1968_s0 = sld [smem:[#allocation14_spill]]  ;;  %s1969_s4 = sld [smem:[#allocation15_spill]] }
 0x1c4   : > { %p1205_p12 = scmp.ge.s32.totalorder %s1536_s22, 2 }
 0x1c9   : > { %s999_s23 = sand.u32 1, %s1968_s0   ;;  %p1970_p13 = scmp.ne.s32.totalorder %s1969_s4, 0 }
 0x1ca   : > { %s1000_s12 = scalar_lea.sflag [#allocation5], %s999_s23 }
 0x1cb   : > { %p1199_p4 = pnand %p1205_p12, %p1970_p13 }
 0x1cd   : > { %1491 = dma.done.wait (!%p1199_p4), %s1000_s12, 128  }
 0x1ce   : > { %1493 = vsyncadd (!%p1199_p4), %s1000_s12, 4294967168  ;;  %s22_s22 = sadd.s32 1, %s1536_s22   ;;  %s1971_s27 = sld [smem:[#allocation16_spill]] }
 0x1cf   : > { %p19_p0 = scmp.ge.s32.totalorder %s22_s22, 6   ;;  %s1972_s12 = smov %s1500_s13 }
 0x1d0   : > { %s1973_s13 = smov %s1504_s14  ;;  %s1974_s14 = smov %s1752_s10 }
 0x1d1   : > { %s1975_s15 = smov %s1512_s16  ;;  %s1976_s16 = smov %s1516_s17 }
 0x1d2   : > { %s1977_s17 = smov %s1761_s2  ;;  %s1978_s18 = smov %s1528_s20 }
 0x1d3   : > { %s1979_s19 = smov %s1532_s21  ;;  %s1981_s21 = smov %s1987_s11 }
 0x1d4   : > { %s1980_s20 = smov %s1971_s27  ;;  %21 = sbr.rel (!%p19_p0) target bundleno = 14 (0xe), region = 102 }
 0x1db   :  { %1005 = vsyncpa [#allocation4], 1 }
 0x1dc   :  { %1007 = vsyncpa [#allocation4 + $0x1], 1 }
 0x1dd   :  { %1008 = vsyncpa [#allocation7], 1 }
 0x1de   :  { %1010 = vsyncpa [#allocation7 + $0x1], 1 }
 0x1df   :  { %1011 = vsyncpa [#allocation5], 1 }
 0x1e0   :  { %1013 = vsyncpa [#allocation5 + $0x1], 1 }

</bundles_post_ra>
